<compile_context>
chip_gen: v7x
topology: tpu7x:2x2x1
jax: 0.10.0
libtpu: 0.0.40
codegen_flags: <defaults>
</compile_context>

<pallas_src>
import functools
import numpy as np
import jax
import jax.numpy as jnp
from jax.experimental import pallas as pl
from jax.experimental.pallas import tpu as pltpu

GROWTH = 32
INIT_FEATURES = 64
BN_SIZE = 4
BOTTLENECK = BN_SIZE * GROWTH          # 128
BLOCK_CONFIG = (6, 12, 48, 32)         # DenseNet-201
BN_EPS = 1e-5


def _round_up(x, m):
    return (x + m - 1) // m * m


def _pick_tile(n, candidates):
    for c in candidates:
        if n % c == 0:
            return c
    return candidates[-1]


def _row_block(m):
    """Row padding / row-tile size used for all (rows, channels) slabs."""
    tm = min(256, _round_up(m, 8))
    return _round_up(m, tm), tm


# ------------------------------------------------------------------
# Fused matmul kernel (MXU) with optional BN+ReLU prologue / epilogue
# ------------------------------------------------------------------

def _fmm_kernel(a_ref, b_ref, s1_ref, b1_ref, s2_ref, b2_ref, o_ref, acc_ref,
                *, prologue, epilogue):
    @pl.when(pl.program_id(2) == 0)
    def _():
        acc_ref[...] = jnp.zeros_like(acc_ref)

    a = a_ref[...]
    if prologue:                                   # folded BatchNorm + ReLU on A
        a = jnp.maximum(a.astype(jnp.float32) * s1_ref[...] + b1_ref[...], 0.0)
    acc_ref[...] += jnp.dot(a.astype(jnp.bfloat16), b_ref[...],
                            preferred_element_type=jnp.float32)

    @pl.when(pl.program_id(2) == pl.num_programs(2) - 1)
    def _():
        r = acc_ref[...]
        if epilogue == "bn_relu":                  # folded BatchNorm + ReLU on out
            r = jnp.maximum(r * s2_ref[...] + b2_ref[...], 0.0)
        elif epilogue == "bias_sigmoid":           # classifier: bias + Sigmoid
            r = 1.0 / (1.0 + jnp.exp(-(r + b2_ref[...])))
        o_ref[...] = r.astype(o_ref.dtype)


@functools.lru_cache(maxsize=None)
def _get_fused_matmul(Mp, K, Nn, tm, tn, tk, prologue, epilogue, out_dtype):
    kern = functools.partial(_fmm_kernel, prologue=prologue, epilogue=epilogue)
    f = pl.pallas_call(
        kern,
        out_shape=jax.ShapeDtypeStruct((Mp, Nn), out_dtype),
        grid_spec=pltpu.PrefetchScalarGridSpec(
            num_scalar_prefetch=0,
            grid=(Mp // tm, Nn // tn, K // tk),
            in_specs=[pl.BlockSpec((tm, tk), lambda i, j, k: (i, k)),
                      pl.BlockSpec((tk, tn), lambda i, j, k: (k, j)),
                      pl.BlockSpec((1, tk), lambda i, j, k: (0, k)),
                      pl.BlockSpec((1, tk), lambda i, j, k: (0, k)),
                      pl.BlockSpec((1, tn), lambda i, j, k: (0, j)),
                      pl.BlockSpec((1, tn), lambda i, j, k: (0, j))],
            out_specs=pl.BlockSpec((tm, tn), lambda i, j, k: (i, j)),
            scratch_shapes=[pltpu.VMEM((tm, tn), jnp.float32)]),
        compiler_params=pltpu.CompilerParams(
            dimension_semantics=("parallel", "parallel", "arbitrary")),
    )
    return jax.jit(f)


def fused_matmul(a, b, *, s1=None, b1=None, s2=None, b2=None,
                 prologue=False, epilogue="none", out_dtype=jnp.bfloat16):
    """o = epilogue(prologue(a[:, :K]) @ b).

    a : (Mp, Ka) with Ka >= K (only the first K columns are read), Mp % 8 == 0
    b : (K, Nn) bf16 weights, K % 128 == 0, Nn % 128 == 0
    s1/b1 : (1, K)  folded-BN scale/bias (+ReLU) applied to A tiles
    s2/b2 : (1, Nn) scale/bias applied to the output tile
    """
    Mp = a.shape[0]
    K, Nn = b.shape
    tm = _pick_tile(Mp, (256, 128, 64, 32, 16, 8))
    tn = 128
    tk = _pick_tile(K, (512, 256, 128))
    if s1 is None:
        s1 = jnp.zeros((1, K), jnp.float32)
    if b1 is None:
        b1 = jnp.zeros((1, K), jnp.float32)
    if s2 is None:
        s2 = jnp.zeros((1, Nn), jnp.float32)
    if b2 is None:
        b2 = jnp.zeros((1, Nn), jnp.float32)
    f = _get_fused_matmul(Mp, K, Nn, tm, tn, tk,
                          bool(prologue), str(epilogue), out_dtype)
    return f(a, b, s1, b1, s2, b2)


# ------------------------------------------------------------------
# Gridded tap-reduce kernels (max / mean pooling)
# ------------------------------------------------------------------

def _tap_max_kernel(t_ref, o_ref):
    x = t_ref[...].astype(jnp.float32)
    o_ref[...] = jnp.max(x, axis=0).astype(o_ref.dtype)


def _tap_mean_kernel(t_ref, o_ref):
    x = t_ref[...].astype(jnp.float32)
    o_ref[...] = (jnp.sum(x, axis=0) * (1.0 / x.shape[0])).astype(o_ref.dtype)


@functools.lru_cache(maxsize=None)
def _get_tap_reduce(R, Mp, C, tm, op, out_dtype):
    kern = _tap_max_kernel if op == "max" else _tap_mean_kernel
    f = pl.pallas_call(
        kern,
        out_shape=jax.ShapeDtypeStruct((Mp, C), out_dtype),
        grid_spec=pltpu.PrefetchScalarGridSpec(
            num_scalar_prefetch=0,
            grid=(Mp // tm,),
            in_specs=[pl.BlockSpec((R, tm, C), lambda i: (0, i, 0))],
            out_specs=pl.BlockSpec((tm, C), lambda i: (i, 0))),
        compiler_params=pltpu.CompilerParams(
            dimension_semantics=("parallel",)),
    )
    return jax.jit(f)


def _tap_reduce(taps, M, C, op, out_dtype):
    """taps: (R, M, C) -> (M, C), reduced over R with a row-tiled Pallas kernel."""
    R = taps.shape[0]
    Mp, tm = _row_block(M)
    if Mp > M:
        taps = jnp.pad(taps, ((0, 0), (0, Mp - M), (0, 0)))
    y = _get_tap_reduce(R, Mp, C, tm, op, out_dtype)(taps)
    return y[:M] if Mp > M else y


# ------------------------------------------------------------------
# Fused norm5 + ReLU + global average pool
# ------------------------------------------------------------------

def _bnrelu_gap_kernel(x_ref, s_ref, b_ref, o_ref):
    x = x_ref[...].astype(jnp.float32)
    x = jnp.maximum(x * s_ref[...] + b_ref[...], 0.0)
    o_ref[...] = jnp.mean(x, axis=1)


@functools.lru_cache(maxsize=None)
def _get_bnrelu_gap(N, HW, C):
    f = pl.pallas_call(
        _bnrelu_gap_kernel,
        out_shape=jax.ShapeDtypeStruct((N, C), jnp.float32),
        grid_spec=pltpu.PrefetchScalarGridSpec(
            num_scalar_prefetch=0,
            grid=(C // 128,),
            in_specs=[pl.BlockSpec((N, HW, 128), lambda c: (0, 0, c)),
                      pl.BlockSpec((1, 128), lambda c: (0, c)),
                      pl.BlockSpec((1, 128), lambda c: (0, c))],
            out_specs=pl.BlockSpec((N, 128), lambda c: (0, c))),
        compiler_params=pltpu.CompilerParams(
            dimension_semantics=("parallel",)),
    )
    return jax.jit(f)


def bnrelu_gap(x, scale, bias):
    """x: (N, HW, C) -> (N, C); fused folded-BN + ReLU + global average pool."""
    N, HW, C = x.shape
    return _get_bnrelu_gap(N, HW, C)(x, scale, bias)


# ------------------------------------------------------------------
# Conv / pooling glue
# ------------------------------------------------------------------

def _im2col(x, k, stride, pad):
    # TODO(synk): this materializes k*k shifted copies in HBM; a direct Pallas
    # conv with halo'd input blocks would remove that traffic entirely.
    N, H, W, C = x.shape
    Ho = (H + 2 * pad - k) // stride + 1
    Wo = (W + 2 * pad - k) // stride + 1
    xp = jnp.pad(x, ((0, 0), (pad, pad), (pad, pad), (0, 0)))
    cols = []
    for di in range(k):
        for dj in range(k):
            cols.append(xp[:, di:di + (Ho - 1) * stride + 1:stride,
                              dj:dj + (Wo - 1) * stride + 1:stride, :])
    return jnp.concatenate(cols, axis=-1), Ho, Wo


def maxpool_3x3_s2_p1(x):
    N, H, W, C = x.shape
    Ho = (H + 2 - 3) // 2 + 1
    Wo = (W + 2 - 3) // 2 + 1
    xp = jnp.pad(x, ((0, 0), (1, 1), (1, 1), (0, 0)),
                 constant_values=-jnp.inf)
    taps = [xp[:, di:di + (Ho - 1) * 2 + 1:2, dj:dj + (Wo - 1) * 2 + 1:2, :]
            for di in range(3) for dj in range(3)]
    t = jnp.stack(taps, axis=0).reshape(9, N * Ho * Wo, C)
    y = _tap_reduce(t, N * Ho * Wo, C, "max", x.dtype)
    return y.reshape(N, Ho, Wo, C)


def avgpool_2x2_s2(x):
    N, H, W, C = x.shape
    Ho, Wo = H // 2, W // 2
    taps = [x[:, di::2, dj::2, :] for di in range(2) for dj in range(2)]
    t = jnp.stack(taps, axis=0).reshape(4, N * Ho * Wo, C)
    y = _tap_reduce(t, N * Ho * Wo, C, "mean", x.dtype)
    return y.reshape(N, Ho, Wo, C)


# ------------------------------------------------------------------
# Deterministic synthetic parameters, pre-laid-out for the kernels
# (weights: matmul layout, bf16, channel-padded; BN folded to scale/bias)
# ------------------------------------------------------------------

def _conv_w(rng, cout, cin, k):
    fan_in = cin * k * k
    return (rng.standard_normal((cout, cin, k, k)).astype(np.float32)
            / np.sqrt(fan_in))


def _bn(rng, c):
    gamma = 1.0 + 0.1 * rng.standard_normal(c).astype(np.float32)
    beta = 0.1 * rng.standard_normal(c).astype(np.float32)
    mean = 0.1 * rng.standard_normal(c).astype(np.float32)
    var = 1.0 + 0.5 * rng.random(c).astype(np.float32)
    scale = gamma / np.sqrt(var + BN_EPS)
    bias = beta - mean * scale
    return scale.astype(np.float32), bias.astype(np.float32)


def build_densenet201_params(rng, class_count):
    p = {"class_count": class_count}

    # Stem conv 7x7/s2 (3 -> 64); norm0 folded into the matmul epilogue.
    w0 = _conv_w(rng, INIT_FEATURES, 3, 7)
    s0, b0 = _bn(rng, INIT_FEATURES)
    k0 = 3 * 7 * 7
    k0p = _round_up(k0, 128)
    w0m = np.zeros((k0p, 128), np.float32)
    w0m[:k0, :INIT_FEATURES] = w0.transpose(2, 3, 1, 0).reshape(k0, INIT_FEATURES)
    p["w0"] = jnp.asarray(w0m, jnp.bfloat16)
    p["s0"] = jnp.asarray(np.pad(s0, (0, 128 - INIT_FEATURES)).reshape(1, 128))
    p["b0"] = jnp.asarray(np.pad(b0, (0, 128 - INIT_FEATURES)).reshape(1, 128))

    nfeat = INIT_FEATURES
    blocks, trans, widths = [], [], []
    for bi, nlayers in enumerate(BLOCK_CONFIG):
        widths.append(_round_up(nfeat + nlayers * GROWTH, 128))
        layers = []
        for li in range(nlayers):
            cin = nfeat + li * GROWTH
            kp = _round_up(cin, 128)
            s1, b1 = _bn(rng, cin)
            w1 = _conv_w(rng, BOTTLENECK, cin, 1)
            s2, b2 = _bn(rng, BOTTLENECK)
            w2 = _conv_w(rng, GROWTH, BOTTLENECK, 3)

            w1m = np.zeros((kp, BOTTLENECK), np.float32)
            w1m[:cin, :] = w1[:, :, 0, 0].T
            w2m = np.zeros((9 * BOTTLENECK, 128), np.float32)
            w2m[:, :GROWTH] = w2.transpose(2, 3, 1, 0).reshape(
                9 * BOTTLENECK, GROWTH)
            layers.append(dict(
                w1=jnp.asarray(w1m, jnp.bfloat16),
                s1=jnp.asarray(np.pad(s1, (0, kp - cin)).reshape(1, kp)),
                b1=jnp.asarray(np.pad(b1, (0, kp - cin)).reshape(1, kp)),
                s2=jnp.asarray(s2.reshape(1, BOTTLENECK)),
                b2=jnp.asarray(b2.reshape(1, BOTTLENECK)),
                w2=jnp.asarray(w2m, jnp.bfloat16)))
        blocks.append(layers)
        nfeat += nlayers * GROWTH

        if bi != len(BLOCK_CONFIG) - 1:
            st, bt = _bn(rng, nfeat)
            wt = _conv_w(rng, nfeat // 2, nfeat, 1)
            kp_t = _round_up(nfeat, 128)
            np_t = _round_up(nfeat // 2, 128)
            wtm = np.zeros((kp_t, np_t), np.float32)
            wtm[:nfeat, :nfeat // 2] = wt[:, :, 0, 0].T
            trans.append(dict(
                w=jnp.asarray(wtm, jnp.bfloat16),
                s=jnp.asarray(np.pad(st, (0, kp_t - nfeat)).reshape(1, kp_t)),
                b=jnp.asarray(np.pad(bt, (0, kp_t - nfeat)).reshape(1, kp_t)),
                cout=nfeat // 2))
            nfeat //= 2

    p["blocks"], p["trans"], p["block_width"] = blocks, trans, widths

    # norm5 (folded) + classifier (Linear + Sigmoid); nfeat == 1920.
    s5, b5 = _bn(rng, nfeat)
    p["s5"] = jnp.asarray(s5.reshape(1, nfeat))
    p["b5"] = jnp.asarray(b5.reshape(1, nfeat))
    fcw = (rng.standard_normal((class_count, nfeat)).astype(np.float32)
           / np.sqrt(nfeat))
    fcb = 0.01 * rng.standard_normal(class_count).astype(np.float32)
    wfc = np.zeros((nfeat, 128), np.float32)
    wfc[:, :class_count] = fcw.T
    bfc = np.zeros((1, 128), np.float32)
    bfc[0, :class_count] = fcb
    p["fcw"] = jnp.asarray(wfc, jnp.bfloat16)
    p["fcb"] = jnp.asarray(bfc)
    return p


# ------------------------------------------------------------------
# Forward pass (torchvision DenseNet.forward with Linear+Sigmoid head)
# ------------------------------------------------------------------

def densenet201_forward(x_nchw, params):
    x = jnp.transpose(x_nchw, (0, 2, 3, 1)).astype(jnp.bfloat16)   # NCHW -> NHWC
    N = x.shape[0]

    # ---- stem: conv7x7/s2 (+ fused norm0/ReLU epilogue) -> maxpool3x3/s2 ----
    patches, Ho, Wo = _im2col(x, 7, 2, 3)
    M = N * Ho * Wo
    Mp, _ = _row_block(M)
    kraw = patches.shape[-1]
    k0p = params["w0"].shape[0]
    a = jnp.pad(patches.reshape(M, kraw), ((0, Mp - M), (0, k0p - kraw)))
    y = fused_matmul(a, params["w0"], s2=params["s0"], b2=params["b0"],
                     epilogue="bn_relu")
    stem = y[:M, :INIT_FEATURES].reshape(N, Ho, Wo, INIT_FEATURES)
    x = maxpool_3x3_s2_p1(stem)

    # ---- dense blocks: features kept in one channel-padded bf16 slab ----
    feat = None
    for bi, nlayers in enumerate(BLOCK_CONFIG):
        Nb, Hb, Wsp, c0 = x.shape
        M = Nb * Hb * Wsp
        Mp, _ = _row_block(M)
        wbuf = params["block_width"][bi]
        buf = jnp.zeros((Mp, wbuf), jnp.bfloat16)
        buf = buf.at[:M, :c0].set(x.reshape(M, c0))
        cin = c0
        for li in range(nlayers):
            lp = params["blocks"][bi][li]
            # 1x1 bottleneck conv; norm1+ReLU fused as prologue, norm2+ReLU as
            # epilogue.  Reads only the first round_up(cin,128) slab columns.
            z = fused_matmul(buf, lp["w1"], s1=lp["s1"], b1=lp["b1"],
                             s2=lp["s2"], b2=lp["b2"],
                             prologue=True, epilogue="bn_relu")
            zs = (z if Mp == M else z[:M]).reshape(Nb, Hb, Wsp, BOTTLENECK)
            # 3x3 growth conv (im2col + MXU matmul), raw output.
            p3, _, _ = _im2col(zs, 3, 1, 1)
            a3 = p3.reshape(M, 9 * BOTTLENECK)
            if Mp > M:
                a3 = jnp.pad(a3, ((0, Mp - M), (0, 0)))
            ynew = fused_matmul(a3, lp["w2"])
            # Dense connectivity: place the 32 new channels into the slab.
            # TODO(synk): functional .at[].set copies the slab in eager mode; an
            # aliased Pallas column-writer would make this a true in-place store.
            buf = buf.at[:, cin:cin + GROWTH].set(ynew[:, :GROWTH])
            cin += GROWTH

        if bi != len(BLOCK_CONFIG) - 1:
            tp = params["trans"][bi]
            t = fused_matmul(buf, tp["w"], s1=tp["s"], b1=tp["b"],
                             prologue=True)
            ts = (t if Mp == M else t[:M])[:, :tp["cout"]]
            x = avgpool_2x2_s2(ts.reshape(Nb, Hb, Wsp, tp["cout"]))
        else:
            # final norm5 + ReLU + global average pool, fused in one kernel.
            xs = (buf if Mp == M else buf[:M])[:, :cin]
            feat = bnrelu_gap(xs.reshape(Nb, Hb * Wsp, cin),
                              params["s5"], params["b5"])

    # ---- classifier: Linear + Sigmoid (fused bias+sigmoid epilogue) ----
    np_rows = _round_up(N, 8)
    fa = jnp.pad(feat, ((0, np_rows - N), (0, 0)))
    out = fused_matmul(fa, params["fcw"], b2=params["fcb"],
                       epilogue="bias_sigmoid", out_dtype=jnp.float32)
    return out[:N, :params["class_count"]]


# ------------------------------------------------------------------

if __name__ == "__main__":
    class_count = 4
    # 32x32 is the smallest spatial size compatible with DenseNet's stem +
    # three transition downsamplings.
    key = jax.random.PRNGKey(0)
    x = jax.random.normal(key, (2, 3, 32, 32), dtype=jnp.float32)   # NCHW input

    params = build_densenet201_params(np.random.default_rng(0), class_count)

    out = densenet201_forward(x, params)
    out = jax.block_until_ready(out)

    assert out.shape == (2, class_count), out.shape
    assert bool(jnp.all(jnp.isfinite(out)))
    assert bool(jnp.all((out >= 0.0) & (out <= 1.0)))   # sigmoid output range
    print("KERNEL_OK")
</pallas_src>

<mosaic_0001>
module attributes {stable_mosaic.version = 11 : i64} {
  func.func @_fmm_kernel(%arg0: i32, %arg1: i32, %arg2: i32, %arg3: memref<256x256xbf16, #tpu.memory_space<vmem>>, %arg4: memref<256x128xbf16, #tpu.memory_space<vmem>>, %arg5: memref<1x256xf32, #tpu.memory_space<vmem>>, %arg6: memref<1x256xf32, #tpu.memory_space<vmem>>, %arg7: memref<1x128xf32, #tpu.memory_space<vmem>>, %arg8: memref<1x128xf32, #tpu.memory_space<vmem>>, %arg9: memref<256x128xbf16, #tpu.memory_space<vmem>>, %arg10: memref<256x128xf32, #tpu.memory_space<vmem>>) attributes {dimension_semantics = [#tpu.dimension_semantics<parallel>, #tpu.dimension_semantics<parallel>, #tpu.dimension_semantics<arbitrary>], iteration_bounds = array<i64: 2, 1, 1>, scalar_prefetch = 0 : i64, scratch_operands = 1 : i64, tpu.core_type = #tpu.core_type<tc>, window_params = [{transform_indices = @transform_0, window_bounds = array<i64: 256, 256>}, {transform_indices = @transform_1, window_bounds = array<i64: 256, 128>}, {transform_indices = @transform_2, window_bounds = array<i64: 1, 256>}, {transform_indices = @transform_3, window_bounds = array<i64: 1, 256>}, {transform_indices = @transform_4, window_bounds = array<i64: 1, 128>}, {transform_indices = @transform_5, window_bounds = array<i64: 1, 128>}, {transform_indices = @transform_6, window_bounds = array<i64: 256, 128>}]} {
    %c0_i32 = arith.constant 0 : i32
    %0 = arith.cmpi eq, %arg2, %c0_i32 : i32
    %1 = arith.extui %0 : i1 to i32
    %c0_i32_0 = arith.constant 0 : i32
    %2 = arith.cmpi ne, %1, %c0_i32_0 : i32
    scf.if %2 {
      %cst_10 = arith.constant 0.000000e+00 : f32
      %12 = vector.broadcast %cst_10 : f32 to vector<256x128xf32>
      %c0_11 = arith.constant 0 : index
      %c0_12 = arith.constant 0 : index
      %13 = vector.load %arg10[%c0_11, %c0_12] : memref<256x128xf32, #tpu.memory_space<vmem>>, vector<256x128xf32>
      tpu.vector_store %arg10[%c0_11, %c0_12], %12 {strides = array<i32>} : memref<256x128xf32, #tpu.memory_space<vmem>>, vector<256x128xf32>,
    } else {
    }
    %c0 = arith.constant 0 : index
    %c0_1 = arith.constant 0 : index
    %3 = vector.load %arg3[%c0, %c0_1] : memref<256x256xbf16, #tpu.memory_space<vmem>>, vector<256x256xbf16>
    %c0_2 = arith.constant 0 : index
    %c0_3 = arith.constant 0 : index
    %4 = vector.load %arg10[%c0_2, %c0_3] : memref<256x128xf32, #tpu.memory_space<vmem>>, vector<256x128xf32>
    %c0_4 = arith.constant 0 : index
    %c0_5 = arith.constant 0 : index
    %5 = vector.load %arg4[%c0_4, %c0_5] : memref<256x128xbf16, #tpu.memory_space<vmem>>, vector<256x128xbf16>
    %cst = arith.constant dense<0.000000e+00> : vector<256x128xf32>
    %6 = tpu.matmul %3, %5, %cst {dimension_numbers = #tpu.dot_dimension_numbers<[1], [0], [0], [1], [0, 0, 1, 1], [], []>} : vector<256x256xbf16>, vector<256x128xbf16>, vector<256x128xf32> -> vector<256x128xf32>
    %7 = arith.addf %4, %6 : vector<256x128xf32>
    %c0_6 = arith.constant 0 : index
    %c0_7 = arith.constant 0 : index
    %8 = vector.load %arg10[%c0_6, %c0_7] : memref<256x128xf32, #tpu.memory_space<vmem>>, vector<256x128xf32>
    tpu.vector_store %arg10[%c0_6, %c0_7], %7 {strides = array<i32>} : memref<256x128xf32, #tpu.memory_space<vmem>>, vector<256x128xf32>,
    %c0_i32_8 = arith.constant 0 : i32
    %9 = arith.cmpi eq, %arg2, %c0_i32_8 : i32
    %10 = arith.extui %9 : i1 to i32
    %c0_i32_9 = arith.constant 0 : i32
    %11 = arith.cmpi ne, %10, %c0_i32_9 : i32
    scf.if %11 {
      %c0_10 = arith.constant 0 : index
      %c0_11 = arith.constant 0 : index
      %12 = vector.load %arg10[%c0_10, %c0_11] : memref<256x128xf32, #tpu.memory_space<vmem>>, vector<256x128xf32>
      %c0_12 = arith.constant 0 : index
      %c0_13 = arith.constant 0 : index
      %13 = vector.load %arg7[%c0_12, %c0_13] : memref<1x128xf32, #tpu.memory_space<vmem>>, vector<1x128xf32>
      %14 = vector.broadcast %13 : vector<1x128xf32> to vector<256x128xf32>
      %15 = arith.mulf %12, %14 : vector<256x128xf32>
      %c0_14 = arith.constant 0 : index
      %c0_15 = arith.constant 0 : index
      %16 = vector.load %arg8[%c0_14, %c0_15] : memref<1x128xf32, #tpu.memory_space<vmem>>, vector<1x128xf32>
      %17 = vector.broadcast %16 : vector<1x128xf32> to vector<256x128xf32>
      %18 = arith.addf %15, %17 : vector<256x128xf32>
      %cst_16 = arith.constant 0.000000e+00 : f32
      %19 = vector.broadcast %cst_16 : f32 to vector<256x128xf32>
      %20 = arith.maximumf %18, %19 : vector<256x128xf32>
      %21 = arith.truncf %20 : vector<256x128xf32> to vector<256x128xbf16>
      %c0_17 = arith.constant 0 : index
      %c0_18 = arith.constant 0 : index
      %22 = vector.load %arg9[%c0_17, %c0_18] : memref<256x128xbf16, #tpu.memory_space<vmem>>, vector<256x128xbf16>
      tpu.vector_store %arg9[%c0_17, %c0_18], %21 {strides = array<i32>} : memref<256x128xbf16, #tpu.memory_space<vmem>>, vector<256x128xbf16>,
    } else {
    }
    return
  }
  func.func @transform_0(%arg0: i32, %arg1: i32, %arg2: i32) -> (i32, i32) {
    %c0_i32 = arith.constant 0 : i32
    return %arg0, %arg2 : i32, i32
  }
  func.func @transform_1(%arg0: i32, %arg1: i32, %arg2: i32) -> (i32, i32) {
    %c0_i32 = arith.constant 0 : i32
    return %arg2, %arg1 : i32, i32
  }
  func.func @transform_2(%arg0: i32, %arg1: i32, %arg2: i32) -> (i32, i32) {
    %c0_i32 = arith.constant 0 : i32
    %c0_i32_0 = arith.constant 0 : i32
    return %c0_i32, %arg2 : i32, i32
  }
  func.func @transform_3(%arg0: i32, %arg1: i32, %arg2: i32) -> (i32, i32) {
    %c0_i32 = arith.constant 0 : i32
    %c0_i32_0 = arith.constant 0 : i32
    return %c0_i32, %arg2 : i32, i32
  }
  func.func @transform_4(%arg0: i32, %arg1: i32, %arg2: i32) -> (i32, i32) {
    %c0_i32 = arith.constant 0 : i32
    %c0_i32_0 = arith.constant 0 : i32
    return %c0_i32, %arg1 : i32, i32
  }
  func.func @transform_5(%arg0: i32, %arg1: i32, %arg2: i32) -> (i32, i32) {
    %c0_i32 = arith.constant 0 : i32
    %c0_i32_0 = arith.constant 0 : i32
    return %c0_i32, %arg1 : i32, i32
  }
  func.func @transform_6(%arg0: i32, %arg1: i32, %arg2: i32) -> (i32, i32) {
    %c0_i32 = arith.constant 0 : i32
    return %arg0, %arg1 : i32, i32
  }
}

</mosaic_0001>

<bundles_post_ra>
// kernel: tpu_custom_call.1
= control target key start
LH: loop header
LB: loop body
LE: loop exit
PB: predicated region body
PF: predicated region fallthrough
CT: control target
= control target key end

     0   :  { %11 = vsyncpa [#allocation4], 0  ;;  %s2519_s0 = inlined_call_operand.hbm [shape: bf16[512,256], index: 0, kind: input, shape index: {}]   ;;  %s2520_s1 = inlined_call_operand.hbm [shape: bf16[256,128], index: 1, kind: input, shape index: {}]   ;;  %s2521_s2 = inlined_call_operand.vmem [shape: f32[1,256], index: 2, kind: input, shape index: {}]   ;;  %s2522_s3 = inlined_call_operand.vmem [shape: f32[1,256], index: 3, kind: input, shape index: {}]   ;;  %s2523_s4 = inlined_call_operand.vmem [shape: f32[1,128], index: 4, kind: input, shape index: {}]   ;;  %s2524_s5 = inlined_call_operand.vmem [shape: f32[1,128], index: 5, kind: input, shape index: {}]   ;;  %s2525_s6 = inlined_call_operand.hbm [shape: bf16[512,128], index: 6, kind: output, shape index: {}]  }
   0x1   :  { %13 = vsyncpa [#allocation4 + $0x1], 0 }
   0x2   :  { %14 = vsyncpa [#allocation7], 0 }
   0x3   :  { %15 = vsyncpa [#allocation5], 0 }
   0x4   :  { %17 = vsyncpa [#allocation5 + $0x1], 0  ;;  %s2172_s21 = smov 0   ;;  %s2174_s2 = smov 0  }
   0x5   :  { %s2176_s22 = smov 0   ;;  %s2178_s3 = smov 0  }
   0x6   :  { %s2180_s23 = smov 0   ;;  %s2182_s24 = smov 0  }
   0x7 LB: > { %s1477_s25 = sadd.s32 4294967295, %s2126_s24   ;;  %s1478_s26 = sadd.s32 4294967294, %s2126_s24   ;;  %s2126_s24 = sphi %s2182_s24, %s23_s24   ;;  %s2122_s23 = sphi %s2180_s23, %s2549_s23   ;;  %s2118_s3 = sphi %s2178_s3, %s2548_s3   ;;  %s2114_s22 = sphi %s2176_s22, %s2547_s22   ;;  %s2110_s2 = sphi %s2174_s2, %s2546_s2   ;;  %s2106_s21 = sphi %s2172_s21, %s2545_s21  }
   0x8   : > { %p64_p0 = scmp.ne.s32.totalorder %s2110_s2, %s2106_s21  ;;  %p2206_p1 = scmp.eq.s32.totalorder %s1477_s25, 0 }
   0x9   : > { %p2210_p2 = scmp.eq.s32.totalorder %s1477_s25, 1  ;;  %p228_p3 = scmp.eq.s32.totalorder %s1478_s26, 1 }
   0xa   : > { %s2530_s27 = scalar_select %p2206_p1, 1, 0 }
   0xb   : > { %s2531_s28 = scalar_select %p2210_p2, 1, 0 }
   0xc   : > { %p2216_p4 = por %p2206_p1, %p64_p0  ;;  %p1479_p5 = scmp.ge.s32.totalorder %s2126_s24, 1 }
   0xd   : > { %p2221_p6 = por %p228_p3, %p64_p0  ;;  %p235_p7 = scmp.lt.s32.totalorder %s2126_s24, 3 }
   0xe   : > { %s2532_s29 = scalar_select %p2216_p4, 1, 0 }
   0xf   : > { %s2533_s30 = scalar_select %p2221_p6, 1, 0 }
  0x10   : > { %p2226_p8 = pnand %p1479_p5, %p235_p7  ;;  %s2128_s8 = smov [#allocation6]  }
  0x11   : > { %s251_s9 = sshll.u32 %s2128_s8, 4  ;;  %s42_s11 = sadd.s32 1, %s2122_s23  ;;  %s252_s9 = int_to_ptr.vmem [resolvable:$true] %s251_s9 }
  0x12   : > { %s2534_s7 = scalar_select %p2226_p8, 1, 0 }
  0x13   : > { %p1847_p9 = pneg %p2226_p8  ;;  %s1982_s14 = scalar_lea.hbm %s2520_s1, 2048 }
  0x14   : > { %p1983_p12 = scmp.ne.s32.totalorder %s2520_s1, %s1982_s14  ;;  %p1989_p5 = scmp.lt.u32.totalorder %s1982_s14, %s2520_s1 }
  0x15   : > { %p2235_p11 = pnand %p1847_p9, %p2206_p1 }
  0x17   : > { %p1984_p13 = pneg %p2235_p11 }
  0x19   : > { %p1985_p0 = pnand %p1984_p13, %p1983_p12 }
  0x1b   : > { %p1986_p3 = pneg %p1985_p0 }
  0x1d   : > { %p1991_p7 = pnand %p1989_p5, %p1986_p3 }
  0x1f   : > { %1994 = shalt.err (!%p1991_p7)
}
  0x20   : > { %s1995_s19 = scalar_lea.vmem %s252_s9, 2048  ;;  %p2003_p1 = scmp.lt.s32.totalorder %s252_s9, %s252_s9 }
  0x21   : > { %p1996_p9 = scmp.ne.s32.totalorder %s252_s9, %s1995_s19  ;;  %p2004_p4 = scmp.lt.s32.totalorder %s1995_s19, %s1995_s19 }
  0x23   : > { %p1998_p10 = pnand %p1996_p9, %p1984_p13  ;;  %p2005_p8 = por %p2004_p4, %p2003_p1 }
  0x25   : > { %p1999_p6 = pneg %p1998_p10 }
  0x27   : > { %p2006_p2 = pnand %p2005_p8, %p1999_p6 }
  0x29   : > { %2009 = shalt.err (!%p2006_p2)
}
  0x2a   : > { %s2129_s20 = smov 64   ;;  %s2130_s25 = smov 4  }
  0x2b   : > { %1850 = dma.hbm_to_vmem [thread:$0]  (!%p2235_p11), %s2520_s1, 2048, %s252_s9, [#allocation7], %s2129_s20, %s2129_s20, %s2130_s25  }
  0x2c   : > { %p44_p1 = scmp.ge.s32.totalorder %s42_s11, 2  ;;  %s51_s12 = sadd.s32 1, %s2114_s22 }
  0x2d   : > { %p58_p2 = scmp.ne.s32.totalorder %s2114_s22, %s2110_s2  ;;  %p59_p4 = scmp.eq.s32.totalorder %s2126_s24, 0 }
  0x2e   : > { %s2551_s11 = smov (%p44_p1, %s42_s11), 0  ;;  %p2537_p8 = scmp.ne.s32.totalorder %s2531_s28, 0 }
  0x2f   : > { %p2262_p6 = por %p59_p4, %p58_p2  ;;  %s46_s10 = ssub.s32 %s2122_s23, %s2551_s11 }
  0x30   : > { %p2268_p10 = por %p2537_p8, %p58_p2  ;;  %p1860_p12 = scmp.lt.s32.totalorder %s2126_s24, 2 }
  0x31   : > { %p49_p11 = scmp.eq.s32.totalorder %s46_s10, 0  ;;  %s293_s9 = sand.u32 1, %s2114_s22  }
  0x32   : > { %s1486_s15 = sshll.u32 %s293_s9, 8  ;;  %s1582_s17 = sshll.u32 %s2122_s23, 12 }
  0x33   : > { %s2277_s16 = scalar_select %p49_p11, %s2114_s22, %s51_s12  }
  0x34   : > { %s2283_s20 = scalar_lea.hbm %s2519_s0, %s1582_s17  ;;  %s297_s28 = scalar_lea.vmem [#allocation3], %s1486_s15 }
  0x35   : > { %s307_s25 = sshll.u32 %s297_s28, 4  ;;  %p2289_p13 = pnand %p1860_p12, %p2262_p6  ;;  %s2285_s25 = int_to_ptr.vmem [resolvable:$true] %s307_s25 }
  0x36   : > { %s2293_s8 = scalar_lea.sflag [#allocation4], %s293_s9  ;;  %s2010_s12 = scalar_lea.hbm %s2283_s20, 4096 }
  0x37   : > { %p2011_p0 = scmp.ne.s32.totalorder %s2283_s20, %s2010_s12  ;;  %p2012_p3 = pneg %p2289_p13 }
  0x38   : > { %s2015_s13 = scalar_lea.hbm %s2519_s0, 8192  ;;  %p2016_p9 = scmp.lt.u32.totalorder %s2283_s20, %s2519_s0 }
  0x39   : > { %p2013_p5 = pnand %p2012_p3, %p2011_p0  ;;  %p2017_p1 = scmp.lt.u32.totalorder %s2015_s13, %s2010_s12 }
  0x3a   : > { %p2019_p4 = scmp.lt.u32.totalorder %s2010_s12, %s2283_s20 }
  0x3b   : > { %p2014_p7 = pneg %p2013_p5  ;;  %p2018_p2 = por %p2017_p1, %p2016_p9 }
  0x3d   : > { %p2020_p6 = por %p2019_p4, %p2018_p2 }
  0x3f   : > { %p2021_p8 = pnand %p2020_p6, %p2014_p7 }
  0x41   : > { %2024 = shalt.err (!%p2021_p8)
}
  0x42   : > { %s2025_s9 = scalar_lea.vmem %s2285_s25, 4096  ;;  %s2131_s19 = smov [#allocation3]  }
  0x43   : > { %p2026_p12 = scmp.ne.s32.totalorder %s2285_s25, %s2025_s9  ;;  %s2030_s28 = sshll.u32 %s2131_s19, 4  ;;  %s2031_s28 = int_to_ptr.vmem [resolvable:$false] %s2030_s28 }
  0x44   : > { %s2032_s10 = scalar_lea.vmem %s2031_s28, 8192  ;;  %p2033_p5 = scmp.lt.s32.totalorder %s2285_s25, %s2031_s28 }
  0x45   : > { %p2028_p11 = pnand %p2026_p12, %p2012_p3  ;;  %p2034_p9 = scmp.lt.s32.totalorder %s2032_s10, %s2025_s9 }
  0x47   : > { %p2029_p0 = pneg %p2028_p11  ;;  %p2035_p1 = por %p2034_p9, %p2033_p5 }
  0x49   : > { %p2036_p2 = pnand %p2035_p1, %p2029_p0 }
  0x4b   : > { %2039 = shalt.err (!%p2036_p2)
}
  0x4c   : > { %s2132_s12 = smov 128   ;;  %s2133_s15 = smov 8  }
  0x4d   : > { %1854 = dma.hbm_to_vmem [thread:$0]  (!%p2289_p13), %s2283_s20, 4096, %s2285_s25, %s2293_s8, %s2132_s12, %s2132_s12, %s2133_s15  }
  0x4e   : > { %p2540_p3 = scmp.ne.s32.totalorder %s2534_s7, 0 }
  0x4f   : > { %s2324_s13 = sand.u32 (!%p2540_p3), 1, %s2110_s2   ;;  %p2541_p7 = scmp.ne.s32.totalorder (!%p2540_p3), %s2532_s29, 0 }
  0x50   : > { %319 = sbr.rel (%p2540_p3) target bundleno = 421 (0x1a5), region = 44  ;;  %s1491_s17 = sshll.u32 (!%p2540_p3), %s2324_s13, 8 }
  0x51   : > { %s322_s18 = scalar_lea.sflag (!%p2540_p3), [#allocation4], %s2324_s13  ;;  %s2328_s9 = scalar_lea.vmem (!%p2540_p3), [#allocation3], %s1491_s17 }
  0x57   : > { %2093 = dma.done.wait (%p2541_p7), %s322_s18, 4096  }
  0x58   : > { %2095 = vsyncadd (%p2541_p7), %s322_s18, 4294963200  ;;  %p2542_p13 = scmp.ne.s32.totalorder %s2530_s27, 0 }
  0x5a   : > { %2097 = dma.done.wait (%p2542_p13), [#allocation7], 2048  }
  0x5b   : > { %2099 = vsyncadd (%p2542_p13), [#allocation7], 4294965248  ;;  %v1918_v0 = vld [vmem:[#allocation6 + $0x40] sm:$0xff]   ;;  %v1920_v2 = vld [vmem:[#allocation6 + $0x48] sm:$0xff]   ;;  %s1493_s25 = sshll.u32 %s2324_s13, 7  ;;  %s1615_s8 = sshll.u32 %s2118_s3, 11 }
  0x5c   : > { %v1919_v1 = vld [vmem:[#allocation6] sm:$0xff]   ;;  %1711 = vmatprep.subr.bf16.mxu0 %v1918_v0  ;;  %1823 = vmatprep.subr.bf16.mxu1 %v1918_v0  ;;  %v1921_v3 = vld [vmem:[#allocation6 + $0x8] sm:$0xff]   ;;  %v1922_v4 = vld [vmem:[#allocation6 + $0x50] sm:$0xff]   ;;  %s2391_s26 = scalar_lea.vmem [#allocation8], %s1493_s25  ;;  %s2466_s12 = scalar_lea.hbm %s2525_s6, %s1615_s8 }
  0x5d   : > { %1712 = vmatpush3.bf16.msra.mxu0 %v1919_v1  ;;  %1831 = vmatpush3.bf16.msra.mxu1 %v1919_v1  ;;  %v1923_v5 = vld [vmem:[#allocation6 + $0x10] sm:$0xff]   ;;  %v1924_v6 = vld [vmem:[#allocation6 + $0x58] sm:$0xff]   ;;  %v1926_v8 = vld [vmem:[#allocation6 + $0x60] sm:$0xff]   ;;  %s1326_s19 = sshll.u32 %s2391_s26, 4  ;;  %s1312_s3 = scalar_lea.sflag [#allocation5], %s2324_s13  ;;  %s2468_s19 = int_to_ptr.vmem [resolvable:$true] %s1326_s19 }
  0x5e   : > { %1713 = vmatprep.subr.bf16.mxu0 %v1920_v2  ;;  %1824 = vmatprep.subr.bf16.mxu1 %v1920_v2  ;;  %v1925_v7 = vld [vmem:[#allocation6 + $0x18] sm:$0xff]   ;;  %v1927_v9 = vld [vmem:[#allocation6 + $0x20] sm:$0xff]   ;;  %v1928_v10 = vld [vmem:[#allocation6 + $0x68] sm:$0xff]   ;;  %s2040_s15 = scalar_lea.vmem %s2468_s19, 2048  ;;  %s2134_s17 = smov [#allocation8]  }
  0x5f   : > { %v1936_v11 = vld [vmem:[%s2328_s9 + $0x4] ss:$8 sps:$4 sm:$0xff]   ;;  %v1930_v14 = vld [vmem:[#allocation6 + $0x70] sm:$0xff]   ;;  %v1932_v16 = vld [vmem:[#allocation6 + $0x78] sm:$0xff]   ;;  %p2041_p4 = scmp.ne.s32.totalorder %s2468_s19, %s2040_s15  ;;  %s2044_s18 = sshll.u32 %s2134_s17, 4  ;;  %s2045_s18 = int_to_ptr.vmem [resolvable:$false] %s2044_s18 }
  0x60   : > { %v1939_v12 = vld [vmem:[%s2328_s9 + $0x84] ss:$8 sps:$4 sm:$0xff]   ;;  %813 = vmatprep.mubr.bf16.mxu0 %v1936_v11  ;;  %v1931_v15 = vld [vmem:[#allocation6 + $0x30] sm:$0xff]   ;;  %v1933_v17 = vld [vmem:[#allocation6 + $0x38] sm:$0xff]   ;;  %p2047_p12 = scmp.lt.s32.totalorder %s2468_s19, %s2045_s18 }
  0x61   : > { %1714 = vmatpush3.bf16.msra.mxu0 %v1921_v3  ;;  %1832 = vmatpush3.bf16.msra.mxu1 %v1921_v3  ;;  %v1929_v13 = vld [vmem:[#allocation6 + $0x28] sm:$0xff]   ;;  %v1940_v20 = vld [vmem:[%s2328_s9 + $0x14] ss:$8 sps:$4 sm:$0xff]   ;;  %v1944_v22 = vld [vmem:[%s2328_s9 + $0x10] ss:$8 sps:$4 sm:$0xff]   ;;  %p2042_p6 = pnand %p2041_p4, %p2268_p10 }
  0x62   : > { %1715 = vmatprep.subr.bf16.mxu0 %v1922_v4  ;;  %1825 = vmatprep.subr.bf16.mxu1 %v1922_v4  ;;  %v1934_v18 = vld [vmem:[%s2328_s9] ss:$8 sps:$4 sm:$0xff]   ;;  %v1942_v21 = vld [vmem:[%s2328_s9 + $0x94] ss:$8 sps:$4 sm:$0xff]   ;;  %v1945_v23 = vld [vmem:[%s2328_s9 + $0x90] ss:$8 sps:$4 sm:$0xff]  }
  0x63   : > { %877 = vmatprep.mubr.bf16.mxu1 %v1939_v12  ;;  %v1937_v19 = vld [vmem:[%s2328_s9 + $0x80] ss:$8 sps:$4 sm:$0xff]   ;;  %v1946_v24 = vld [vmem:[%s2328_s9 + $0x24] ss:$8 sps:$4 sm:$0xff]   ;;  %v1952_v28 = vld [vmem:[%s2328_s9 + $0x34] ss:$8 sps:$4 sm:$0xff]   ;;  %p2043_p8 = pneg %p2042_p6 }
  0x64   : > { %v1948_v25 = vld [vmem:[%s2328_s9 + $0xa4] ss:$8 sps:$4 sm:$0xff]   ;;  %v1950_v26 = vld [vmem:[%s2328_s9 + $0x20] ss:$8 sps:$4 sm:$0xff]   ;;  %v1954_v29 = vld [vmem:[%s2328_s9 + $0xb4] ss:$8 sps:$4 sm:$0xff]  }
  0x65   : > { %1716 = vmatpush3.bf16.msra.mxu0 %v1923_v5  ;;  %1833 = vmatpush3.bf16.msra.mxu1 %v1923_v5  ;;  %v1951_v27 = vld [vmem:[%s2328_s9 + $0xa0] ss:$8 sps:$4 sm:$0xff]   ;;  %v1956_v30 = vld [vmem:[%s2328_s9 + $0x30] ss:$8 sps:$4 sm:$0xff]   ;;  %v1958_v32 = vld [vmem:[%s2328_s9 + $0x44] ss:$8 sps:$4 sm:$0xff]  }
  0x66   : > { %1717 = vmatprep.subr.bf16.mxu0 %v1924_v6  ;;  %1826 = vmatprep.subr.bf16.mxu1 %v1924_v6  ;;  %v1957_v31 = vld [vmem:[%s2328_s9 + $0xb0] ss:$8 sps:$4 sm:$0xff]   ;;  %v1960_v33 = vld [vmem:[%s2328_s9 + $0xc4] ss:$8 sps:$4 sm:$0xff]   ;;  %v1962_v34 = vld [vmem:[%s2328_s9 + $0x40] ss:$8 sps:$4 sm:$0xff]  }
  0x67   : > { %v1963_v35 = vld [vmem:[%s2328_s9 + $0xc0] ss:$8 sps:$4 sm:$0xff]   ;;  %v1964_v36 = vld [vmem:[%s2328_s9 + $0x54] ss:$8 sps:$4 sm:$0xff]   ;;  %v1968_v38 = vld [vmem:[%s2328_s9 + $0x50] ss:$8 sps:$4 sm:$0xff]  }
  0x68   : > { %v1966_v37 = vld [vmem:[%s2328_s9 + $0xd4] ss:$8 sps:$4 sm:$0xff]   ;;  %v1969_v39 = vld [vmem:[%s2328_s9 + $0xd0] ss:$8 sps:$4 sm:$0xff]   ;;  %v1970_v40 = vld [vmem:[%s2328_s9 + $0x64] ss:$8 sps:$4 sm:$0xff]  }
  0x69   : > { %1718 = vmatpush3.bf16.msra.mxu0 %v1925_v7  ;;  %1834 = vmatpush3.bf16.msra.mxu1 %v1925_v7  ;;  %v1972_v41 = vld [vmem:[%s2328_s9 + $0xe4] ss:$8 sps:$4 sm:$0xff]   ;;  %v1974_v42 = vld [vmem:[%s2328_s9 + $0x60] ss:$8 sps:$4 sm:$0xff]   ;;  %v1976_v44 = vld [vmem:[%s2328_s9 + $0x74] ss:$8 sps:$4 sm:$0xff]  }
  0x6a   : > { %1719 = vmatprep.subr.bf16.mxu0 %v1926_v8  ;;  %1827 = vmatprep.subr.bf16.mxu1 %v1926_v8  ;;  %v1975_v43 = vld [vmem:[%s2328_s9 + $0xe0] ss:$8 sps:$4 sm:$0xff]   ;;  %v1978_v45 = vld [vmem:[%s2328_s9 + $0xf4] ss:$8 sps:$4 sm:$0xff]   ;;  %v1980_v46 = vld [vmem:[%s2328_s9 + $0x70] ss:$8 sps:$4 sm:$0xff]  }
  0x6b   : > { %v1981_v47 = vld [vmem:[%s2328_s9 + $0xf0] ss:$8 sps:$4 sm:$0xff]   ;;  %v2373_v51 = vld [vmem:[%s2523_s4] ss:$0 sm:$0xff]  ;;  %s2046_s9 = scalar_lea.vmem %s2045_s18, 4096 }
  0x6c   : > { %v2378_v57 = vld [vmem:[%s2524_s5] ss:$0 sm:$0xff]  ;;  %p2048_p11 = scmp.lt.s32.totalorder %s2046_s9, %s2040_s15 }
  0x6d   : > { %1720 = vmatpush3.bf16.msra.mxu0 %v1927_v9  ;;  %1835 = vmatpush3.bf16.msra.mxu1 %v1927_v9 }
  0x6e   : > { %1721 = vmatprep.subr.bf16.mxu0 %v1928_v10  ;;  %1828 = vmatprep.subr.bf16.mxu1 %v1928_v10  ;;  %p2049_p0 = por %p2048_p11, %p2047_p12 }
  0x70   : > { %p2050_p5 = pnand %p2049_p0, %p2043_p8 }
  0x71   : > { %1722 = vmatpush3.bf16.msra.mxu0 %v1929_v13  ;;  %1836 = vmatpush3.bf16.msra.mxu1 %v1929_v13 }
  0x72   : > { %1723 = vmatprep.subr.bf16.mxu0 %v1930_v14  ;;  %1829 = vmatprep.subr.bf16.mxu1 %v1930_v14 }
  0x75   : > { %1724 = vmatpush3.bf16.msra.mxu0 %v1931_v15  ;;  %1837 = vmatpush3.bf16.msra.mxu1 %v1931_v15 }
  0x76   : > { %1725 = vmatprep.subr.bf16.mxu0 %v1932_v16  ;;  %1830 = vmatprep.subr.bf16.mxu1 %v1932_v16 }
  0x79   : > { %1726 = vmatpush3.bf16.msra.mxu0 %v1933_v17  ;;  %1838 = vmatpush3.bf16.msra.mxu1 %v1933_v17 }
  0x7c   : > { %814 = vmatmul.mubr.bf16.vlgmr.msra.gmra.mrb[0].mxu0 %v1934_v18  ;;  %878 = vmatmul.mubr.bf16.vlgmr.msra.gmra.mrb[0].mxu1 %v1937_v19 }
  0x7d   : > { %821 = vmatprep.mubr.bf16.mxu0 %v1940_v20  ;;  %885 = vmatprep.mubr.bf16.mxu1 %v1942_v21 }
  0x84   : > { %822 = vmatmul.mubr.bf16.gmra.mrb[4].mxu0 %v1944_v22  ;;  %886 = vmatmul.mubr.bf16.gmra.mrb[4].mxu1 %v1945_v23 }
  0x85   : > { %829 = vmatprep.mubr.bf16.mxu0 %v1946_v24  ;;  %893 = vmatprep.mubr.bf16.mxu1 %v1948_v25 }
  0x8c   : > { %830 = vmatmul.mubr.bf16.gmra.mrb[8].mxu0 %v1950_v26  ;;  %894 = vmatmul.mubr.bf16.gmra.mrb[8].mxu1 %v1951_v27 }
  0x8d   : > { %837 = vmatprep.mubr.bf16.mxu0 %v1952_v28  ;;  %901 = vmatprep.mubr.bf16.mxu1 %v1954_v29 }
  0x94   : > { %838 = vmatmul.mubr.bf16.gmra.mrb[12].mxu0 %v1956_v30  ;;  %902 = vmatmul.mubr.bf16.gmra.mrb[12].mxu1 %v1957_v31 }
  0x95   : > { %845 = vmatprep.mubr.bf16.mxu0 %v1958_v32  ;;  %909 = vmatprep.mubr.bf16.mxu1 %v1960_v33 }
  0x9c   : > { %846 = vmatmul.mubr.bf16.gmra.mrb[16].mxu0 %v1962_v34  ;;  %910 = vmatmul.mubr.bf16.gmra.mrb[16].mxu1 %v1963_v35 }
  0x9d   : > { %853 = vmatprep.mubr.bf16.mxu0 %v1964_v36  ;;  %917 = vmatprep.mubr.bf16.mxu1 %v1966_v37 }
  0xa4   : > { %854 = vmatmul.mubr.bf16.gmra.mrb[20].mxu0 %v1968_v38  ;;  %918 = vmatmul.mubr.bf16.gmra.mrb[20].mxu1 %v1969_v39 }
  0xa5   : > { %861 = vmatprep.mubr.bf16.mxu0 %v1970_v40  ;;  %925 = vmatprep.mubr.bf16.mxu1 %v1972_v41 }
  0xac   : > { %862 = vmatmul.mubr.bf16.gmra.mrb[24].mxu0 %v1974_v42  ;;  %926 = vmatmul.mubr.bf16.gmra.mrb[24].mxu1 %v1975_v43 }
  0xad   : > { %869 = vmatprep.mubr.bf16.mxu0 %v1976_v44  ;;  %933 = vmatprep.mubr.bf16.mxu1 %v1978_v45 }
  0xb4   : > { %870 = vmatmul.mubr.bf16.gmra.mrb[28].mxu0 %v1980_v46  ;;  %934 = vmatmul.mubr.bf16.gmra.mrb[28].mxu1 %v1981_v47 }
 0x14f   : > { %v1727_v48 = vpop.f32.mrb[0].mxu0  ;;  %v1775_v49 = vpop.f32.mrb[0].mxu1 }
 0x150   : > { %v1728_v50 = vpop.f32.mrb[1].mxu0  ;;  %v1776_v52 = vpop.f32.mrb[1].mxu1 }
 0x151   : > { %v1729_v53 = vadd.f32 %v1728_v50, %v1727_v48  ;;  %v1777_v54 = vadd.f32 %v1776_v52, %v1775_v49  ;;  %v1730_v55 = vpop.f32.mrb[2].mxu0  ;;  %v1778_v56 = vpop.f32.mrb[2].mxu1 }
 0x152   : > { %v1731_v58 = vpop.f32.mrb[3].mxu0  ;;  %v1779_v59 = vpop.f32.mrb[3].mxu1 }
 0x153   : > { %v1048_v60 = vmul.f32 %v1729_v53, %v2373_v51  ;;  %v1064_v61 = vmul.f32 %v1777_v54, %v2373_v51  ;;  %v1732_v62 = vadd.f32 %v1731_v58, %v1730_v55  ;;  %v1780_v63 = vadd.f32 %v1779_v59, %v1778_v56 }
 0x155   : > { %v1087_v0 = vadd.f32 %v2378_v57, %v1048_v60  ;;  %v1103_v1 = vadd.f32 %v2378_v57, %v1064_v61  ;;  %v1049_v2 = vmul.f32 %v1732_v62, %v2373_v51  ;;  %v1065_v3 = vmul.f32 %v1780_v63, %v2373_v51 }
 0x157   : > { %v1088_v4 = vadd.f32 %v2378_v57, %v1049_v2  ;;  %v1104_v5 = vadd.f32 %v2378_v57, %v1065_v3  ;;  %v1733_v6 = vpop.f32.mrb[4].mxu0  ;;  %v1781_v7 = vpop.f32.mrb[4].mxu1  ;;  %v1119_v8 = vmax.f32 %v1087_v0, 0.0  ;;  %v1135_v9 = vmax.f32 %v1103_v1, 0.0 }
 0x158   : > { %v1734_v10 = vpop.f32.mrb[5].mxu0  ;;  %v1782_v11 = vpop.f32.mrb[5].mxu1 }
 0x159   : > { %v1120_v12 = vmax.f32 %v1088_v4, 0.0  ;;  %v1136_v13 = vmax.f32 %v1104_v5, 0.0  ;;  %v1735_v14 = vadd.f32 %v1734_v10, %v1733_v6  ;;  %v1783_v15 = vadd.f32 %v1782_v11, %v1781_v7  ;;  %v1736_v16 = vpop.f32.mrb[6].mxu0  ;;  %v1784_v17 = vpop.f32.mrb[6].mxu1 }
 0x15a   : > { %v1737_v18 = vpop.f32.mrb[7].mxu0  ;;  %v1785_v19 = vpop.f32.mrb[7].mxu1 }
 0x15b   : > { %v1619_v20 = vpack.c.bf16 %v1120_v12, %v1119_v8  ;;  %v1659_v21 = vpack.c.bf16 %v1136_v13, %v1135_v9  ;;  %v1050_v22 = vmul.f32 %v1735_v14, %v2373_v51  ;;  %v1066_v23 = vmul.f32 %v1783_v15, %v2373_v51 }
 0x15c   : > { %v1738_v24 = vadd.f32 %v1737_v18, %v1736_v16  ;;  %v1786_v25 = vadd.f32 %v1785_v19, %v1784_v17 }
 0x15d   : > { %1620 = vst [vmem:[%s2391_s26] sm:$0xff] %v1619_v20   ;;  %1703 = vst [vmem:[%s2391_s26 + $0x40] sm:$0xff] %v1659_v21   ;;  %v1089_v26 = vadd.f32 %v2378_v57, %v1050_v22  ;;  %v1105_v27 = vadd.f32 %v2378_v57, %v1066_v23 }
 0x15e   : > { %v1051_v28 = vmul.f32 %v1738_v24, %v2373_v51  ;;  %v1067_v29 = vmul.f32 %v1786_v25, %v2373_v51 }
 0x15f   : > { %v1739_v30 = vpop.f32.mrb[8].mxu0  ;;  %v1787_v31 = vpop.f32.mrb[8].mxu1  ;;  %v1121_v40 = vmax.f32 %v1089_v26, 0.0  ;;  %v1137_v41 = vmax.f32 %v1105_v27, 0.0 }
 0x160   : > { %v1090_v32 = vadd.f32 %v2378_v57, %v1051_v28  ;;  %v1106_v33 = vadd.f32 %v2378_v57, %v1067_v29  ;;  %v1740_v34 = vpop.f32.mrb[9].mxu0  ;;  %v1788_v35 = vpop.f32.mrb[9].mxu1 }
 0x161   : > { %v1741_v36 = vadd.f32 %v1740_v34, %v1739_v30  ;;  %v1789_v37 = vadd.f32 %v1788_v35, %v1787_v31  ;;  %v1742_v38 = vpop.f32.mrb[10].mxu0  ;;  %v1790_v39 = vpop.f32.mrb[10].mxu1 }
 0x162   : > { %v1122_v42 = vmax.f32 %v1090_v32, 0.0  ;;  %v1138_v43 = vmax.f32 %v1106_v33, 0.0  ;;  %v1743_v44 = vpop.f32.mrb[11].mxu0  ;;  %v1791_v45 = vpop.f32.mrb[11].mxu1 }
 0x163   : > { %v1052_v46 = vmul.f32 %v1741_v36, %v2373_v51  ;;  %v1068_v47 = vmul.f32 %v1789_v37, %v2373_v51  ;;  %v1744_v48 = vadd.f32 %v1743_v44, %v1742_v38  ;;  %v1792_v49 = vadd.f32 %v1791_v45, %v1790_v39 }
 0x164   : > { %v1624_v50 = vpack.c.bf16 %v1122_v42, %v1121_v40  ;;  %v1664_v52 = vpack.c.bf16 %v1138_v43, %v1137_v41 }
 0x165   : > { %v1091_v53 = vadd.f32 %v2378_v57, %v1052_v46  ;;  %v1107_v54 = vadd.f32 %v2378_v57, %v1068_v47  ;;  %v1053_v55 = vmul.f32 %v1744_v48, %v2373_v51  ;;  %v1069_v56 = vmul.f32 %v1792_v49, %v2373_v51 }
 0x166   : > { %1696 = vst [vmem:[%s2391_s26 + $0x8] sm:$0xff] %v1624_v50   ;;  %1704 = vst [vmem:[%s2391_s26 + $0x48] sm:$0xff] %v1664_v52  }
 0x167   : > { %v1092_v58 = vadd.f32 %v2378_v57, %v1053_v55  ;;  %v1108_v59 = vadd.f32 %v2378_v57, %v1069_v56  ;;  %v1745_v60 = vpop.f32.mrb[12].mxu0  ;;  %v1793_v61 = vpop.f32.mrb[12].mxu1  ;;  %v1123_v62 = vmax.f32 %v1091_v53, 0.0  ;;  %v1139_v63 = vmax.f32 %v1107_v54, 0.0 }
 0x168   : > { %v1746_v0 = vpop.f32.mrb[13].mxu0  ;;  %v1794_v1 = vpop.f32.mrb[13].mxu1 }
 0x169   : > { %v1124_v2 = vmax.f32 %v1092_v58, 0.0  ;;  %v1140_v3 = vmax.f32 %v1108_v59, 0.0  ;;  %v1747_v4 = vadd.f32 %v1746_v0, %v1745_v60  ;;  %v1795_v5 = vadd.f32 %v1794_v1, %v1793_v61  ;;  %v1748_v6 = vpop.f32.mrb[14].mxu0  ;;  %v1796_v7 = vpop.f32.mrb[14].mxu1 }
 0x16a   : > { %v1749_v8 = vpop.f32.mrb[15].mxu0  ;;  %v1797_v9 = vpop.f32.mrb[15].mxu1 }
 0x16b   : > { %v1629_v10 = vpack.c.bf16 %v1124_v2, %v1123_v62  ;;  %v1669_v11 = vpack.c.bf16 %v1140_v3, %v1139_v63  ;;  %v1054_v12 = vmul.f32 %v1747_v4, %v2373_v51  ;;  %v1070_v13 = vmul.f32 %v1795_v5, %v2373_v51 }
 0x16c   : > { %v1750_v14 = vadd.f32 %v1749_v8, %v1748_v6  ;;  %v1798_v15 = vadd.f32 %v1797_v9, %v1796_v7 }
 0x16d   : > { %1697 = vst [vmem:[%s2391_s26 + $0x10] sm:$0xff] %v1629_v10   ;;  %1705 = vst [vmem:[%s2391_s26 + $0x50] sm:$0xff] %v1669_v11   ;;  %v1093_v16 = vadd.f32 %v2378_v57, %v1054_v12  ;;  %v1109_v17 = vadd.f32 %v2378_v57, %v1070_v13 }
 0x16e   : > { %v1055_v18 = vmul.f32 %v1750_v14, %v2373_v51  ;;  %v1071_v19 = vmul.f32 %v1798_v15, %v2373_v51 }
 0x16f   : > { %v1751_v20 = vpop.f32.mrb[16].mxu0  ;;  %v1799_v21 = vpop.f32.mrb[16].mxu1  ;;  %v1125_v30 = vmax.f32 %v1093_v16, 0.0  ;;  %v1141_v31 = vmax.f32 %v1109_v17, 0.0 }
 0x170   : > { %v1094_v22 = vadd.f32 %v2378_v57, %v1055_v18  ;;  %v1110_v23 = vadd.f32 %v2378_v57, %v1071_v19  ;;  %v1752_v24 = vpop.f32.mrb[17].mxu0  ;;  %v1800_v25 = vpop.f32.mrb[17].mxu1 }
 0x171   : > { %v1753_v26 = vadd.f32 %v1752_v24, %v1751_v20  ;;  %v1801_v27 = vadd.f32 %v1800_v25, %v1799_v21  ;;  %v1754_v28 = vpop.f32.mrb[18].mxu0  ;;  %v1802_v29 = vpop.f32.mrb[18].mxu1 }
 0x172   : > { %v1126_v32 = vmax.f32 %v1094_v22, 0.0  ;;  %v1142_v33 = vmax.f32 %v1110_v23, 0.0  ;;  %v1755_v34 = vpop.f32.mrb[19].mxu0  ;;  %v1803_v35 = vpop.f32.mrb[19].mxu1 }
 0x173   : > { %v1056_v36 = vmul.f32 %v1753_v26, %v2373_v51  ;;  %v1072_v37 = vmul.f32 %v1801_v27, %v2373_v51  ;;  %v1756_v38 = vadd.f32 %v1755_v34, %v1754_v28  ;;  %v1804_v39 = vadd.f32 %v1803_v35, %v1802_v29 }
 0x174   : > { %v1634_v40 = vpack.c.bf16 %v1126_v32, %v1125_v30  ;;  %v1674_v41 = vpack.c.bf16 %v1142_v33, %v1141_v31 }
 0x175   : > { %v1095_v42 = vadd.f32 %v2378_v57, %v1056_v36  ;;  %v1111_v43 = vadd.f32 %v2378_v57, %v1072_v37  ;;  %v1057_v44 = vmul.f32 %v1756_v38, %v2373_v51  ;;  %v1073_v45 = vmul.f32 %v1804_v39, %v2373_v51 }
 0x176   : > { %1698 = vst [vmem:[%s2391_s26 + $0x18] sm:$0xff] %v1634_v40   ;;  %1706 = vst [vmem:[%s2391_s26 + $0x58] sm:$0xff] %v1674_v41  }
 0x177   : > { %v1096_v46 = vadd.f32 %v2378_v57, %v1057_v44  ;;  %v1112_v47 = vadd.f32 %v2378_v57, %v1073_v45  ;;  %v1757_v48 = vpop.f32.mrb[20].mxu0  ;;  %v1805_v49 = vpop.f32.mrb[20].mxu1  ;;  %v1127_v50 = vmax.f32 %v1095_v42, 0.0  ;;  %v1143_v52 = vmax.f32 %v1111_v43, 0.0 }
 0x178   : > { %v1758_v53 = vpop.f32.mrb[21].mxu0  ;;  %v1806_v54 = vpop.f32.mrb[21].mxu1 }
 0x179   : > { %v1128_v55 = vmax.f32 %v1096_v46, 0.0  ;;  %v1144_v56 = vmax.f32 %v1112_v47, 0.0  ;;  %v1759_v58 = vadd.f32 %v1758_v53, %v1757_v48  ;;  %v1807_v59 = vadd.f32 %v1806_v54, %v1805_v49  ;;  %v1760_v60 = vpop.f32.mrb[22].mxu0  ;;  %v1808_v61 = vpop.f32.mrb[22].mxu1 }
 0x17a   : > { %v1761_v62 = vpop.f32.mrb[23].mxu0  ;;  %v1809_v63 = vpop.f32.mrb[23].mxu1 }
 0x17b   : > { %v1639_v0 = vpack.c.bf16 %v1128_v55, %v1127_v50  ;;  %v1679_v1 = vpack.c.bf16 %v1144_v56, %v1143_v52  ;;  %v1058_v2 = vmul.f32 %v1759_v58, %v2373_v51  ;;  %v1074_v3 = vmul.f32 %v1807_v59, %v2373_v51 }
 0x17c   : > { %v1762_v4 = vadd.f32 %v1761_v62, %v1760_v60  ;;  %v1810_v5 = vadd.f32 %v1809_v63, %v1808_v61 }
 0x17d   : > { %1699 = vst [vmem:[%s2391_s26 + $0x20] sm:$0xff] %v1639_v0   ;;  %1707 = vst [vmem:[%s2391_s26 + $0x60] sm:$0xff] %v1679_v1   ;;  %v1097_v6 = vadd.f32 %v2378_v57, %v1058_v2  ;;  %v1113_v7 = vadd.f32 %v2378_v57, %v1074_v3 }
 0x17e   : > { %v1059_v8 = vmul.f32 %v1762_v4, %v2373_v51  ;;  %v1075_v9 = vmul.f32 %v1810_v5, %v2373_v51 }
 0x17f   : > { %v1763_v10 = vpop.f32.mrb[24].mxu0  ;;  %v1811_v11 = vpop.f32.mrb[24].mxu1  ;;  %v1129_v20 = vmax.f32 %v1097_v6, 0.0  ;;  %v1145_v21 = vmax.f32 %v1113_v7, 0.0 }
 0x180   : > { %v1098_v12 = vadd.f32 %v2378_v57, %v1059_v8  ;;  %v1114_v13 = vadd.f32 %v2378_v57, %v1075_v9  ;;  %v1764_v14 = vpop.f32.mrb[25].mxu0  ;;  %v1812_v15 = vpop.f32.mrb[25].mxu1 }
 0x181   : > { %v1765_v16 = vadd.f32 %v1764_v14, %v1763_v10  ;;  %v1813_v17 = vadd.f32 %v1812_v15, %v1811_v11  ;;  %v1766_v18 = vpop.f32.mrb[26].mxu0  ;;  %v1814_v19 = vpop.f32.mrb[26].mxu1 }
 0x182   : > { %v1130_v22 = vmax.f32 %v1098_v12, 0.0  ;;  %v1146_v23 = vmax.f32 %v1114_v13, 0.0  ;;  %v1767_v24 = vpop.f32.mrb[27].mxu0  ;;  %v1815_v25 = vpop.f32.mrb[27].mxu1 }
 0x183   : > { %v1060_v26 = vmul.f32 %v1765_v16, %v2373_v51  ;;  %v1076_v27 = vmul.f32 %v1813_v17, %v2373_v51  ;;  %v1768_v28 = vadd.f32 %v1767_v24, %v1766_v18  ;;  %v1816_v29 = vadd.f32 %v1815_v25, %v1814_v19 }
 0x184   : > { %v1644_v30 = vpack.c.bf16 %v1130_v22, %v1129_v20  ;;  %v1684_v31 = vpack.c.bf16 %v1146_v23, %v1145_v21 }
 0x185   : > { %v1099_v32 = vadd.f32 %v2378_v57, %v1060_v26  ;;  %v1115_v33 = vadd.f32 %v2378_v57, %v1076_v27  ;;  %v1061_v34 = vmul.f32 %v1768_v28, %v2373_v51  ;;  %v1077_v35 = vmul.f32 %v1816_v29, %v2373_v51 }
 0x186   : > { %1700 = vst [vmem:[%s2391_s26 + $0x28] sm:$0xff] %v1644_v30   ;;  %1708 = vst [vmem:[%s2391_s26 + $0x68] sm:$0xff] %v1684_v31  }
 0x187   : > { %v1100_v36 = vadd.f32 %v2378_v57, %v1061_v34  ;;  %v1116_v37 = vadd.f32 %v2378_v57, %v1077_v35  ;;  %v1769_v38 = vpop.f32.mrb[28].mxu0  ;;  %v1817_v39 = vpop.f32.mrb[28].mxu1  ;;  %v1131_v40 = vmax.f32 %v1099_v32, 0.0  ;;  %v1147_v41 = vmax.f32 %v1115_v33, 0.0 }
 0x188   : > { %v1770_v42 = vpop.f32.mrb[29].mxu0  ;;  %v1818_v43 = vpop.f32.mrb[29].mxu1 }
 0x189   : > { %v1132_v44 = vmax.f32 %v1100_v36, 0.0  ;;  %v1148_v45 = vmax.f32 %v1116_v37, 0.0  ;;  %v1771_v46 = vadd.f32 %v1770_v42, %v1769_v38  ;;  %v1819_v47 = vadd.f32 %v1818_v43, %v1817_v39  ;;  %v1772_v48 = vpop.f32.mrb[30].mxu0  ;;  %v1820_v49 = vpop.f32.mrb[30].mxu1 }
 0x18a   : > { %v1773_v50 = vpop.f32.mrb[31].mxu0  ;;  %v1821_v52 = vpop.f32.mrb[31].mxu1 }
 0x18b   : > { %v1649_v53 = vpack.c.bf16 %v1132_v44, %v1131_v40  ;;  %v1689_v54 = vpack.c.bf16 %v1148_v45, %v1147_v41  ;;  %v1062_v55 = vmul.f32 %v1771_v46, %v2373_v51  ;;  %v1078_v56 = vmul.f32 %v1819_v47, %v2373_v51 }
 0x18c   : > { %v1774_v58 = vadd.f32 %v1773_v50, %v1772_v48  ;;  %v1822_v59 = vadd.f32 %v1821_v52, %v1820_v49 }
 0x18d   : > { %1701 = vst [vmem:[%s2391_s26 + $0x30] sm:$0xff] %v1649_v53   ;;  %1709 = vst [vmem:[%s2391_s26 + $0x70] sm:$0xff] %v1689_v54   ;;  %v1101_v60 = vadd.f32 %v2378_v57, %v1062_v55  ;;  %v1117_v61 = vadd.f32 %v2378_v57, %v1078_v56 }
 0x18e   : > { %v1063_v62 = vmul.f32 %v1774_v58, %v2373_v51  ;;  %v1079_v63 = vmul.f32 %v1822_v59, %v2373_v51 }
 0x18f   : > { %v1133_v2 = vmax.f32 %v1101_v60, 0.0  ;;  %v1149_v3 = vmax.f32 %v1117_v61, 0.0 }
 0x190   : > { %v1102_v0 = vadd.f32 %v2378_v57, %v1063_v62  ;;  %v1118_v1 = vadd.f32 %v2378_v57, %v1079_v63 }
 0x192   : > { %v1134_v4 = vmax.f32 %v1102_v0, 0.0  ;;  %v1150_v5 = vmax.f32 %v1118_v1, 0.0 }
 0x194   : > { %v1654_v51 = vpack.c.bf16 %v1134_v4, %v1133_v2  ;;  %v1694_v6 = vpack.c.bf16 %v1150_v5, %v1149_v3 }
 0x196   : > { %1702 = vst [vmem:[%s2391_s26 + $0x38] sm:$0xff] %v1654_v51   ;;  %1710 = vst [vmem:[%s2391_s26 + $0x78] sm:$0xff] %v1694_v6  }
 0x197   : > { %2053 = shalt.err (!%p2050_p5)
}
 0x198   : > { %s2054_s27 = scalar_lea.hbm %s2466_s12, 2048  ;;  %s2058_s20 = scalar_lea.hbm %s2525_s6, 4096 }
 0x199   : > { %p2055_p9 = scmp.ne.s32.totalorder %s2466_s12, %s2054_s27  ;;  %p2059_p3 = scmp.lt.u32.totalorder %s2466_s12, %s2525_s6 }
 0x19a   : > { %p2060_p7 = scmp.lt.u32.totalorder %s2058_s20, %s2054_s27  ;;  %p2062_p4 = scmp.lt.u32.totalorder %s2054_s27, %s2466_s12 }
 0x19b   : > { %p2056_p1 = pnand %p2055_p9, %p2268_p10 }
 0x19c   : > { %p2061_p13 = por %p2060_p7, %p2059_p3 }
 0x19d   : > { %p2057_p2 = pneg %p2056_p1 }
 0x19e   : > { %p2063_p6 = por %p2062_p4, %p2061_p13 }
 0x1a0   : > { %p2064_p8 = pnand %p2063_p6, %p2057_p2 }
 0x1a2   : > { %2067 = shalt.err (!%p2064_p8)
}
 0x1a3   : > { %s2135_s8 = smov 64   ;;  %s2136_s28 = smov 4  }
 0x1a4   : > { %1845 = dma.vmem_to_hbm [thread:$0]  (%p2268_p10), %s2468_s19, 2048, %s2466_s12, %s1312_s3, %s2135_s8, %s2135_s8, %s2136_s28  }
 0x1a5 PF: > { %s1341_s10 = sand.u32 1, %s2106_s21   ;;  %p2543_p12 = scmp.ne.s32.totalorder %s2533_s30, 0 }
 0x1a6   : > { %p2544_p11 = scmp.ge.s32.totalorder %s2126_s24, 2  ;;  %s1342_s15 = scalar_lea.sflag [#allocation5], %s1341_s10 }
 0x1a8   : > { %p1856_p0 = pnand %p2544_p11, %p2543_p12 }
 0x1aa   : > { %2101 = dma.done.wait (!%p1856_p0), %s1342_s15, 2048  }
 0x1ab   : > { %2103 = vsyncadd (!%p1856_p0), %s1342_s15, 4294965248  ;;  %s23_s24 = sadd.s32 1, %s2126_s24   ;;  %s2545_s21 = smov %s2110_s2 }
 0x1ac   : > { %p20_p5 = scmp.ge.s32.totalorder %s23_s24, 4   ;;  %s2546_s2 = smov %s2114_s22 }
 0x1ad   : > { %s2547_s22 = smov %s2277_s16  ;;  %s2548_s3 = smov %s2122_s23 }
 0x1ae   : > { %s2549_s23 = smov %s2551_s11  ;;  %22 = sbr.rel (!%p20_p5) target bundleno = 7 (0x7), region = 114 }
 0x1b5   :  { %1347 = vsyncpa [#allocation4], 1 }
 0x1b6   :  { %1349 = vsyncpa [#allocation4 + $0x1], 1 }
 0x1b7   :  { %1350 = vsyncpa [#allocation7], 1 }
 0x1b8   :  { %1351 = vsyncpa [#allocation5], 1 }
 0x1b9   :  { %1353 = vsyncpa [#allocation5 + $0x1], 1 }

</bundles_post_ra>
